<compile_context>
chip_gen: v6e
topology: v6e:2x2x1
jax: 0.10.0
libtpu: 0.0.40
codegen_flags: <defaults>
</compile_context>

<pallas_src>
import jax
import jax.numpy as jnp
from jax.experimental import pallas as pl
from jax.experimental.pallas import tpu as pltpu

HIDDEN = 128          # fixed by the module: Linear(C*E, 128)
LANE = 128            # TPU lane width
NEG_BIG = -1e30       # bias for padded vocab lanes (exp underflows to 0)
VMEM_LIMIT = 48 * 1024 * 1024   # explicit cap, safe on v5e / v6e / v7x


def _round_up(n, m):
    return ((n + m - 1) // m) * m


def _choose_vocab_tile(vocab, vocab_tile):
    """Lane-dense vocab tile (preferring multiples of 256 to fill the MXU N dim)
    that minimizes vocab padding; ties broken toward the largest tile."""
    v128 = _round_up(vocab, LANE)
    max_tv = min(_round_up(max(vocab_tile, LANE), LANE), v128)
    if max_tv < 256:
        return max_tv                      # tiny vocab -> single 128-lane tile
    candidates = list(range(256, max_tv + 1, 256))
    if max_tv not in candidates:
        candidates.append(max_tv)
    best_tv, best_pad = None, None
    for tv in candidates:
        pad = (-v128) % tv
        if best_pad is None or pad < best_pad or (pad == best_pad and tv > best_tv):
            best_tv, best_pad = tv, pad
    return best_tv


def prepare_cbow_params(emb_table, w1, b1, w2, b2, *, vocab_tile=2048):
    """One-time weight prep (pad + bf16 cast), hoisted out of the per-call path."""
    vocab, embed_dim = emb_table.shape
    d_in, hidden = w1.shape
    assert hidden == HIDDEN and w2.shape == (HIDDEN, vocab)

    tv = _choose_vocab_tile(vocab, vocab_tile)
    v_pad = _round_up(_round_up(vocab, LANE), tv)

    w2p = jnp.pad(w2.astype(jnp.bfloat16), ((0, 0), (0, v_pad - vocab)))
    # padded vocab lanes get a huge negative bias -> exp underflows to 0,
    # so the online logsumexp (and the real lanes of the output) is unaffected.
    b2p = jnp.pad(jnp.asarray(b2, jnp.float32).reshape(1, vocab),
                  ((0, 0), (0, v_pad - vocab)), constant_values=NEG_BIG)

    return dict(
        emb=emb_table.astype(jnp.bfloat16),   # bf16 gather -> bf16 x, no extra cast
        w1=w1.astype(jnp.bfloat16),
        b1=jnp.asarray(b1, jnp.float32).reshape(1, HIDDEN),
        w2=w2p,
        b2=b2p,
        vocab=vocab,
        vocab_pad=v_pad,
        vocab_tile=tv,
        embed_dim=embed_dim,
        d_in=d_in,
    )


def _cbow_kernel(x_ref, w1_ref, b1_ref, w2_ref, b2_ref, out_ref,
                 h_scratch, m_scratch, l_scratch):
    """grid = (batch tile i, phase p, vocab tile v).

    phase 0: accumulate the online logsumexp over vocab tiles (no output writes).
    phase 1: recompute the logits tile and write (logits - lse) to the output.
    """
    p = pl.program_id(1)
    v = pl.program_id(2)

    @pl.when((p == 0) & (v == 0))
    def _init():
        # hidden layer: computed once per batch tile, kept resident in VMEM (bf16).
        h = jnp.dot(x_ref[...], w1_ref[...],
                    preferred_element_type=jnp.float32) + b1_ref[...]
        h_scratch[...] = jnp.maximum(h, 0.0).astype(jnp.bfloat16)
        m_scratch[...] = jnp.full_like(m_scratch, -jnp.inf)
        l_scratch[...] = jnp.zeros_like(l_scratch)

    # second matmul on the streamed (HIDDEN, TV) slice of w2 (bf16 in, f32 acc)
    logits = jnp.dot(h_scratch[...], w2_ref[...],
                     preferred_element_type=jnp.float32) + b2_ref[...]

    @pl.when(p == 0)
    def _accumulate():
        m_prev = m_scratch[...]
        m_new = jnp.maximum(m_prev, jnp.max(logits, axis=1, keepdims=True))
        l_scratch[...] = (l_scratch[...] * jnp.exp(m_prev - m_new)
                          + jnp.sum(jnp.exp(logits - m_new), axis=1, keepdims=True))
        m_scratch[...] = m_new

    @pl.when(p == 1)
    def _write():
        lse = m_scratch[...] + jnp.log(l_scratch[...])
        out_ref[...] = logits - lse


def cbow_forward(context_ids, params, *, batch_tile=256):
    """context_ids: (B, C) int32; returns log-probabilities (B, vocab) f32."""
    B, C = context_ids.shape
    emb = params["emb"]
    E = params["embed_dim"]
    d_in = C * E
    assert d_in == params["d_in"]
    V, V_pad, TV = params["vocab"], params["vocab_pad"], params["vocab_tile"]

    # TODO(synk): fuse the embedding gather into the kernel via
    # PrefetchScalarGridSpec(num_scalar_prefetch=1) + pl.Element-indexed rows
    # to avoid materializing x through HBM.
    x = jnp.take(emb, context_ids, axis=0).reshape(B, d_in)   # bf16

    # --- batch tiling ------------------------------------------------------
    B8 = _round_up(B, 8)
    TB = min(_round_up(max(batch_tile, 8), 8), B8)
    # keep nb >= 2 when the batch is big enough so the "parallel" batch axis
    # can be split across v7x's two TensorCores (no-op on v5e/v6e).
    half = _round_up((B8 + 1) // 2, 8)
    if B8 >= 256 and TB > half:
        TB = half
    B_pad = _round_up(B8, TB)
    if B_pad != B:
        x = jnp.pad(x, ((0, B_pad - B), (0, 0)))

    nb = B_pad // TB
    nv = V_pad // TV

    if nv >= 3:
        w2_spec = pl.BlockSpec((HIDDEN, TV), lambda i, p, v: (0, v),
                               pipeline_mode=pl.Buffered(3))
    else:
        w2_spec = pl.BlockSpec((HIDDEN, TV), lambda i, p, v: (0, v))

    out = pl.pallas_call(
        _cbow_kernel,
        out_shape=jax.ShapeDtypeStruct((B_pad, V_pad), jnp.float32),
        grid=(nb, 2, nv),
        in_specs=[
            pl.BlockSpec((TB, d_in), lambda i, p, v: (i, 0)),
            pl.BlockSpec((d_in, HIDDEN), lambda i, p, v: (0, 0)),
            pl.BlockSpec((1, HIDDEN), lambda i, p, v: (0, 0)),
            w2_spec,
            pl.BlockSpec((1, TV), lambda i, p, v: (0, v)),
        ],
        # phase 0 never writes the output; its block index is pinned to (i, 0)
        # there, so no spurious HBM writeback occurs.  phase 1 writes every
        # (i, v) tile exactly once (all visits to a block are consecutive).
        out_specs=pl.BlockSpec((TB, TV), lambda i, p, v: (i, v * p)),
        scratch_shapes=[
            pltpu.VMEM((TB, HIDDEN), jnp.bfloat16),   # hidden activations (bf16)
            pltpu.VMEM((TB, 1), jnp.float32),         # running max
            pltpu.VMEM((TB, 1), jnp.float32),         # running sum-exp
        ],
        compiler_params=pltpu.CompilerParams(
            dimension_semantics=("parallel", "arbitrary", "arbitrary"),
            vmem_limit_bytes=VMEM_LIMIT,
        ),
    )(x, params["w1"], params["b1"], params["w2"], params["b2"])

    return out[:B, :V]


if __name__ == "__main__":
    # small shapes consistent with the module
    vocab_size, embedding_dim, context_size, batch = 64, 16, 4, 8
    in_features = context_size * embedding_dim

    key = jax.random.PRNGKey(0)
    k_emb, k_w1, k_b1, k_w2, k_b2, k_ids = jax.random.split(key, 6)

    # deterministic, PyTorch-style init (synthetic parameters)
    emb_table = jax.random.normal(k_emb, (vocab_size, embedding_dim), jnp.float32)
    lim1 = 1.0 / jnp.sqrt(jnp.float32(in_features))
    w1 = jax.random.uniform(k_w1, (in_features, HIDDEN), jnp.float32, -lim1, lim1)
    b1 = jax.random.uniform(k_b1, (1, HIDDEN), jnp.float32, -lim1, lim1)
    lim2 = 1.0 / jnp.sqrt(jnp.float32(HIDDEN))
    w2 = jax.random.uniform(k_w2, (HIDDEN, vocab_size), jnp.float32, -lim2, lim2)
    b2 = jax.random.uniform(k_b2, (1, vocab_size), jnp.float32, -lim2, lim2)

    context_ids = jax.random.randint(
        k_ids, (batch, context_size), 0, vocab_size, dtype=jnp.int32
    )

    params = prepare_cbow_params(emb_table, w1, b1, w2, b2)
    log_probs = cbow_forward(context_ids, params)
    jax.block_until_ready(log_probs)

    # pure-JAX reference mirroring the kernel's bf16 matmul inputs / f32 accum
    x_ref = jnp.take(emb_table, context_ids, axis=0).reshape(batch, in_features)
    xb = x_ref.astype(jnp.bfloat16).astype(jnp.float32)
    w1b = w1.astype(jnp.bfloat16).astype(jnp.float32)
    w2b = w2.astype(jnp.bfloat16).astype(jnp.float32)
    h_ref = jnp.maximum(xb @ w1b + b1, 0.0)
    hb = h_ref.astype(jnp.bfloat16).astype(jnp.float32)
    ref = jax.nn.log_softmax(hb @ w2b + b2, axis=1)

    assert log_probs.shape == (batch, vocab_size)
    assert bool(jnp.all(jnp.isfinite(log_probs)))
    assert jnp.allclose(log_probs, ref, atol=5e-3, rtol=5e-3)

    print("KERNEL_OK")
</pallas_src>

<mosaic_0001>
module attributes {stable_mosaic.version = 11 : i64} {
  func.func @_cbow_kernel(%arg0: i32, %arg1: i32, %arg2: i32, %arg3: memref<8x64xbf16, #tpu.memory_space<vmem>>, %arg4: memref<64x128xbf16, #tpu.memory_space<vmem>>, %arg5: memref<1x128xf32, #tpu.memory_space<vmem>>, %arg6: memref<128x128xbf16, #tpu.memory_space<vmem>>, %arg7: memref<1x128xf32, #tpu.memory_space<vmem>>, %arg8: memref<8x128xf32, #tpu.memory_space<vmem>>, %arg9: memref<8x128xbf16, #tpu.memory_space<vmem>>, %arg10: memref<8x1xf32, #tpu.memory_space<vmem>>, %arg11: memref<8x1xf32, #tpu.memory_space<vmem>>) attributes {dimension_semantics = [#tpu.dimension_semantics<parallel>, #tpu.dimension_semantics<arbitrary>, #tpu.dimension_semantics<arbitrary>], iteration_bounds = array<i64: 1, 2, 1>, scalar_prefetch = 0 : i64, scratch_operands = 3 : i64, tpu.core_type = #tpu.core_type<tc>, window_params = [{transform_indices = @transform_0, window_bounds = array<i64: 8, 64>}, {pipeline_mode = #tpu.pipeline_mode<synchronous>, transform_indices = @transform_1, window_bounds = array<i64: 64, 128>}, {pipeline_mode = #tpu.pipeline_mode<synchronous>, transform_indices = @transform_2, window_bounds = array<i64: 1, 128>}, {transform_indices = @transform_3, window_bounds = array<i64: 128, 128>}, {transform_indices = @transform_4, window_bounds = array<i64: 1, 128>}, {transform_indices = @transform_5, window_bounds = array<i64: 8, 128>}]} {
    %c0_i32 = arith.constant 0 : i32
    %0 = arith.cmpi eq, %arg1, %c0_i32 : i32
    %c0_i32_0 = arith.constant 0 : i32
    %1 = arith.cmpi eq, %arg2, %c0_i32_0 : i32
    %2 = arith.andi %0, %1 : i1
    %3 = arith.extui %2 : i1 to i32
    %c0_i32_1 = arith.constant 0 : i32
    %4 = arith.cmpi ne, %3, %c0_i32_1 : i32
    scf.if %4 {
      %c0_10 = arith.constant 0 : index
      %c0_11 = arith.constant 0 : index
      %17 = vector.load %arg3[%c0_10, %c0_11] : memref<8x64xbf16, #tpu.memory_space<vmem>>, vector<8x64xbf16>
      %c0_12 = arith.constant 0 : index
      %c0_13 = arith.constant 0 : index
      %18 = vector.load %arg4[%c0_12, %c0_13] : memref<64x128xbf16, #tpu.memory_space<vmem>>, vector<64x128xbf16>
      %cst_14 = arith.constant dense<0.000000e+00> : vector<8x128xf32>
      %19 = tpu.matmul %17, %18, %cst_14 {dimension_numbers = #tpu.dot_dimension_numbers<[1], [0], [0], [1], [0, 0, 1, 1], [], []>} : vector<8x64xbf16>, vector<64x128xbf16>, vector<8x128xf32> -> vector<8x128xf32>
      %c0_15 = arith.constant 0 : index
      %c0_16 = arith.constant 0 : index
      %20 = vector.load %arg5[%c0_15, %c0_16] : memref<1x128xf32, #tpu.memory_space<vmem>>, vector<1x128xf32>
      %21 = vector.broadcast %20 : vector<1x128xf32> to vector<8x128xf32>
      %22 = arith.addf %19, %21 : vector<8x128xf32>
      %cst_17 = arith.constant 0.000000e+00 : f32
      %23 = vector.broadcast %cst_17 : f32 to vector<8x128xf32>
      %24 = arith.maximumf %22, %23 : vector<8x128xf32>
      %25 = arith.truncf %24 : vector<8x128xf32> to vector<8x128xbf16>
      %c0_18 = arith.constant 0 : index
      %c0_19 = arith.constant 0 : index
      %26 = vector.load %arg9[%c0_18, %c0_19] : memref<8x128xbf16, #tpu.memory_space<vmem>>, vector<8x128xbf16>
      tpu.vector_store %arg9[%c0_18, %c0_19], %25 {strides = array<i32>} : memref<8x128xbf16, #tpu.memory_space<vmem>>, vector<8x128xbf16>,
      %cst_20 = arith.constant 0xFF800000 : f32
      %27 = vector.broadcast %cst_20 : f32 to vector<8x1xf32>
      %c0_21 = arith.constant 0 : index
      %c0_22 = arith.constant 0 : index
      %28 = vector.load %arg10[%c0_21, %c0_22] : memref<8x1xf32, #tpu.memory_space<vmem>>, vector<8x1xf32>
      tpu.vector_store %arg10[%c0_21, %c0_22], %27 {strides = array<i32>} : memref<8x1xf32, #tpu.memory_space<vmem>>, vector<8x1xf32>,
      %cst_23 = arith.constant 0.000000e+00 : f32
      %29 = vector.broadcast %cst_23 : f32 to vector<8x1xf32>
      %c0_24 = arith.constant 0 : index
      %c0_25 = arith.constant 0 : index
      %30 = vector.load %arg11[%c0_24, %c0_25] : memref<8x1xf32, #tpu.memory_space<vmem>>, vector<8x1xf32>
      tpu.vector_store %arg11[%c0_24, %c0_25], %29 {strides = array<i32>} : memref<8x1xf32, #tpu.memory_space<vmem>>, vector<8x1xf32>,
    } else {
    }
    %c0 = arith.constant 0 : index
    %c0_2 = arith.constant 0 : index
    %5 = vector.load %arg9[%c0, %c0_2] : memref<8x128xbf16, #tpu.memory_space<vmem>>, vector<8x128xbf16>
    %c0_3 = arith.constant 0 : index
    %c0_4 = arith.constant 0 : index
    %6 = vector.load %arg6[%c0_3, %c0_4] : memref<128x128xbf16, #tpu.memory_space<vmem>>, vector<128x128xbf16>
    %cst = arith.constant dense<0.000000e+00> : vector<8x128xf32>
    %7 = tpu.matmul %5, %6, %cst {dimension_numbers = #tpu.dot_dimension_numbers<[1], [0], [0], [1], [0, 0, 1, 1], [], []>} : vector<8x128xbf16>, vector<128x128xbf16>, vector<8x128xf32> -> vector<8x128xf32>
    %c0_5 = arith.constant 0 : index
    %c0_6 = arith.constant 0 : index
    %8 = vector.load %arg7[%c0_5, %c0_6] : memref<1x128xf32, #tpu.memory_space<vmem>>, vector<1x128xf32>
    %9 = vector.broadcast %8 : vector<1x128xf32> to vector<8x128xf32>
    %10 = arith.addf %7, %9 : vector<8x128xf32>
    %c0_i32_7 = arith.constant 0 : i32
    %11 = arith.cmpi eq, %arg1, %c0_i32_7 : i32
    %12 = arith.extui %11 : i1 to i32
    %c0_i32_8 = arith.constant 0 : i32
    %13 = arith.cmpi ne, %12, %c0_i32_8 : i32
    scf.if %13 {
      %c0_10 = arith.constant 0 : index
      %c0_11 = arith.constant 0 : index
      %17 = vector.load %arg10[%c0_10, %c0_11] : memref<8x1xf32, #tpu.memory_space<vmem>>, vector<8x1xf32>
      %cst_12 = arith.constant dense<0xFF800000> : vector<8xf32>
      %18 = vector.multi_reduction <maximumf>, %10, %cst_12 [1] : vector<8x128xf32> to vector<8xf32>
      %19 = vector.shape_cast %18 : vector<8xf32> to vector<8x1xf32>
      %20 = arith.maximumf %17, %19 : vector<8x1xf32>
      %c0_13 = arith.constant 0 : index
      %c0_14 = arith.constant 0 : index
      %21 = vector.load %arg11[%c0_13, %c0_14] : memref<8x1xf32, #tpu.memory_space<vmem>>, vector<8x1xf32>
      %22 = arith.subf %17, %20 : vector<8x1xf32>
      %23 = math.exp %22 : vector<8x1xf32>
      %24 = arith.mulf %21, %23 : vector<8x1xf32>
      %25 = vector.broadcast %20 : vector<8x1xf32> to vector<8x128xf32>
      %26 = arith.subf %10, %25 : vector<8x128xf32>
      %27 = math.exp %26 : vector<8x128xf32>
      %cst_15 = arith.constant dense<0.000000e+00> : vector<8xf32>
      %28 = vector.multi_reduction <add>, %27, %cst_15 [1] : vector<8x128xf32> to vector<8xf32>
      %29 = vector.shape_cast %28 : vector<8xf32> to vector<8x1xf32>
      %30 = arith.addf %24, %29 : vector<8x1xf32>
      %c0_16 = arith.constant 0 : index
      %c0_17 = arith.constant 0 : index
      %31 = vector.load %arg11[%c0_16, %c0_17] : memref<8x1xf32, #tpu.memory_space<vmem>>, vector<8x1xf32>
      tpu.vector_store %arg11[%c0_16, %c0_17], %30 {strides = array<i32>} : memref<8x1xf32, #tpu.memory_space<vmem>>, vector<8x1xf32>,
      %c0_18 = arith.constant 0 : index
      %c0_19 = arith.constant 0 : index
      %32 = vector.load %arg10[%c0_18, %c0_19] : memref<8x1xf32, #tpu.memory_space<vmem>>, vector<8x1xf32>
      tpu.vector_store %arg10[%c0_18, %c0_19], %20 {strides = array<i32>} : memref<8x1xf32, #tpu.memory_space<vmem>>, vector<8x1xf32>,
    } else {
    }
    %c1_i32 = arith.constant 1 : i32
    %14 = arith.cmpi eq, %arg1, %c1_i32 : i32
    %15 = arith.extui %14 : i1 to i32
    %c0_i32_9 = arith.constant 0 : i32
    %16 = arith.cmpi ne, %15, %c0_i32_9 : i32
    scf.if %16 {
      %c0_10 = arith.constant 0 : index
      %c0_11 = arith.constant 0 : index
      %17 = vector.load %arg10[%c0_10, %c0_11] : memref<8x1xf32, #tpu.memory_space<vmem>>, vector<8x1xf32>
      %c0_12 = arith.constant 0 : index
      %c0_13 = arith.constant 0 : index
      %18 = vector.load %arg11[%c0_12, %c0_13] : memref<8x1xf32, #tpu.memory_space<vmem>>, vector<8x1xf32>
      %19 = math.log %18 : vector<8x1xf32>
      %20 = arith.addf %17, %19 : vector<8x1xf32>
      %21 = vector.broadcast %20 : vector<8x1xf32> to vector<8x128xf32>
      %22 = arith.subf %10, %21 : vector<8x128xf32>
      %c0_14 = arith.constant 0 : index
      %c0_15 = arith.constant 0 : index
      %23 = vector.load %arg8[%c0_14, %c0_15] : memref<8x128xf32, #tpu.memory_space<vmem>>, vector<8x128xf32>
      tpu.vector_store %arg8[%c0_14, %c0_15], %22 {strides = array<i32>} : memref<8x128xf32, #tpu.memory_space<vmem>>, vector<8x128xf32>,
    } else {
    }
    return
  }
  func.func @transform_0(%arg0: i32, %arg1: i32, %arg2: i32) -> (i32, i32) {
    %c0_i32 = arith.constant 0 : i32
    %c0_i32_0 = arith.constant 0 : i32
    return %arg0, %c0_i32 : i32, i32
  }
  func.func @transform_1(%arg0: i32, %arg1: i32, %arg2: i32) -> (i32, i32) {
    %c0_i32 = arith.constant 0 : i32
    %c0_i32_0 = arith.constant 0 : i32
    %c0_i32_1 = arith.constant 0 : i32
    return %c0_i32, %c0_i32_0 : i32, i32
  }
  func.func @transform_2(%arg0: i32, %arg1: i32, %arg2: i32) -> (i32, i32) {
    %c0_i32 = arith.constant 0 : i32
    %c0_i32_0 = arith.constant 0 : i32
    %c0_i32_1 = arith.constant 0 : i32
    return %c0_i32, %c0_i32_0 : i32, i32
  }
  func.func @transform_3(%arg0: i32, %arg1: i32, %arg2: i32) -> (i32, i32) {
    %c0_i32 = arith.constant 0 : i32
    %c0_i32_0 = arith.constant 0 : i32
    return %c0_i32, %arg2 : i32, i32
  }
  func.func @transform_4(%arg0: i32, %arg1: i32, %arg2: i32) -> (i32, i32) {
    %c0_i32 = arith.constant 0 : i32
    %c0_i32_0 = arith.constant 0 : i32
    return %c0_i32, %arg2 : i32, i32
  }
  func.func @transform_5(%arg0: i32, %arg1: i32, %arg2: i32) -> (i32, i32) {
    %0 = arith.muli %arg2, %arg1 : i32
    %c0_i32 = arith.constant 0 : i32
    return %arg0, %0 : i32, i32
  }
}

</mosaic_0001>

<bundles_post_ra>
// kernel: tpu_custom_call.1
= control target key start
LH: loop header
LB: loop body
LE: loop exit
PB: predicated region body
PF: predicated region fallthrough
CT: control target
= control target key end

     0   :  { %10 = vsyncpa [#allocation6], 0  ;;  %s1151_s0 = inlined_call_operand.hbm [shape: bf16[8,64], index: 0, kind: input, shape index: {}]   ;;  %s1152_s1 = inlined_call_operand.hbm [shape: bf16[64,128], index: 1, kind: input, shape index: {}]   ;;  %s1153_s2 = inlined_call_operand.vmem [shape: f32[1,128], index: 2, kind: input, shape index: {}]   ;;  %s1154_s3 = inlined_call_operand.hbm [shape: bf16[128,128], index: 3, kind: input, shape index: {}]   ;;  %s1155_s4 = inlined_call_operand.vmem [shape: f32[1,128], index: 4, kind: input, shape index: {}]   ;;  %s1156_s5 = inlined_call_operand.hbm [shape: f32[8,128], index: 5, kind: output, shape index: {}]  }
   0x1   :  { %11 = vsyncpa [#allocation9], 0 }
   0x2   :  { %12 = vsyncpa [#allocation7], 0 }
   0x3   :  { %14 = vsyncpa [#allocation7 + $0x1], 0  ;;  %s1027_s18 = smov 0   ;;  %s1029_s19 = smov 0  }
   0x4   :  { %s1031_s20 = smov 0  }
   0x5 LB: > { %s984_s21 = smov [#allocation8]   ;;  %s670_s23 = sadd.s32 4294967295, %s982_s20   ;;  %s982_s20 = sphi %s1031_s20, %s20_s20   ;;  %s978_s19 = sphi %s1029_s19, %s1166_s19   ;;  %s974_s18 = sphi %s1027_s18, %s1165_s18  }
   0x6   : > { %s219_s22 = sshll.u32 %s984_s21, 4  ;;  %s671_s24 = sadd.s32 4294967294, %s982_s20   ;;  %s220_s22 = int_to_ptr.vmem [resolvable:$true] %s219_s22 }
   0x7   : > { %p672_p0 = scmp.ge.s32.totalorder %s982_s20, 1  ;;  %p194_p1 = scmp.lt.s32.totalorder %s982_s20, 3 }
   0x8   : > { %p1048_p2 = scmp.eq.s32.totalorder %s670_s23, 0  ;;  %s35_s28 = sadd.s32 1, %s978_s19 }
   0x9   : > { %p1052_p3 = pnand %p672_p0, %p194_p1  ;;  %p1065_p6 = scmp.ge.s32.totalorder %s35_s28, 2 }
   0xa   : > { %s1159_s25 = scalar_select %p1048_p2, 1, 0 }
   0xb   : > { %p766_p4 = pneg %p1052_p3  ;;  %s857_s30 = scalar_lea.vmem %s220_s22, 512 }
   0xc   : > { %p858_p8 = scmp.ne.s32.totalorder %s220_s22, %s857_s30  ;;  %p865_p11 = scmp.lt.s32.totalorder %s220_s22, %s220_s22 }
   0xd   : > { %p1060_p5 = pnand %p1048_p2, %p766_p4  ;;  %p866_p12 = scmp.lt.s32.totalorder %s857_s30, %s857_s30 }
   0xf   : > { %p848_p7 = pneg %p1060_p5  ;;  %p867_p13 = por %p866_p12, %p865_p11 }
  0x11   : > { %p860_p9 = pnand %p858_p8, %p848_p7 }
  0x13   : > { %p861_p10 = pneg %p860_p9 }
  0x15   : > { %p868_p0 = pnand %p867_p13, %p861_p10 }
  0x17   : > { %871 = shalt.err (!%p868_p0)
}
  0x18   : > { %s985_s6 = smov 64   ;;  %s986_s7 = smov 4  }
  0x19   : > { %772 = dma.hbm_to_vmem [thread:$0]  (!%p1060_p5), %s1152_s1, 512, %s220_s22, [#allocation9], %s985_s6, %s985_s6, %s986_s7  }
  0x1a   : > { %s1168_s28 = smov (%p1065_p6, %s35_s28), 0  ;;  %s987_s10 = smov [#allocation5]  }
  0x1b   : > { %s209_s11 = sshll.u32 %s987_s10, 4  ;;  %s988_s12 = smov [#allocation10]   ;;  %s210_s11 = int_to_ptr.vmem [resolvable:$true] %s209_s11 }
  0x1c   : > { %s237_s13 = sshll.u32 %s988_s12, 4  ;;  %s883_s14 = scalar_lea.vmem %s210_s11, 64  ;;  %s238_s13 = int_to_ptr.vmem [resolvable:$true] %s237_s13 }
  0x1d   : > { %p884_p1 = scmp.ne.s32.totalorder %s210_s11, %s883_s14  ;;  %p891_p9 = scmp.lt.s32.totalorder %s210_s11, %s210_s11 }
  0x1e   : > { %p892_p10 = scmp.lt.s32.totalorder %s883_s14, %s883_s14 }
  0x1f   : > { %p886_p4 = pnand %p884_p1, %p848_p7 }
  0x20   : > { %p893_p11 = por %p892_p10, %p891_p9 }
  0x21   : > { %p887_p8 = pneg %p886_p4 }
  0x23   : > { %p894_p12 = pnand %p893_p11, %p887_p8 }
  0x25   : > { %897 = shalt.err (!%p894_p12)
}
  0x26   : > { %769 = dma.hbm_to_vmem [thread:$0]  (!%p1060_p5), %s1151_s0, 64, %s210_s11, [#allocation6]  }
  0x27   : > { %s909_s17 = scalar_lea.vmem %s238_s13, 1024  ;;  %p917_p1 = scmp.lt.s32.totalorder %s238_s13, %s238_s13 }
  0x28   : > { %p910_p6 = scmp.ne.s32.totalorder %s238_s13, %s909_s17  ;;  %p918_p4 = scmp.lt.s32.totalorder %s909_s17, %s909_s17 }
  0x2a   : > { %p912_p13 = pnand %p910_p6, %p848_p7  ;;  %p919_p2 = por %p918_p4, %p917_p1 }
  0x2c   : > { %p913_p0 = pneg %p912_p13 }
  0x2e   : > { %p920_p9 = pnand %p919_p2, %p913_p0 }
  0x30   : > { %923 = shalt.err (!%p920_p9)
}
  0x31   : > { %775 = dma.hbm_to_vmem [thread:$0]  (!%p1060_p5), %s1154_s3, 1024, %s238_s13, [#allocation9], %s985_s6, %s985_s6, %s986_s7  }
  0x32   : > { %259 = sbr.rel (%p1052_p3) target bundleno = 1097 (0x449), region = 40  ;;  %p1163_p7 = scmp.ne.s32.totalorder (!%p1052_p3), %s1159_s25, 0 }
  0x37   : > { %961 = dma.done.wait (%p1163_p7), [#allocation6], 64  }
  0x38   : > { %963 = vsyncadd (%p1163_p7), [#allocation6], 4294967232 }
  0x39   : > { %965 = dma.done.wait (%p1163_p7), [#allocation9], 1536  }
  0x3a   : > { %967 = vsyncadd (%p1163_p7), [#allocation9], 4294965760  ;;  %p298_p2 = scmp.eq.s32.totalorder %s974_s18, 0 }
  0x3b   : > { %vm391_vm0 = vcmask (%p298_p2), 7168   ;;  %v826_v0 = vld [vmem:[#allocation8 + $0x18] sm:$0xff] (%p298_p2)   ;;  %v989_v1 = vmov (%p298_p2), 0.0   ;;  %v990_v2 = vmov (%p298_p2), -inf   ;;  %v827_v3 = vld [vmem:[#allocation8 + $0x10] sm:$0xff] (%p298_p2)   ;;  %vm991_vm1 = vmmov (%p298_p2), 0  }
  0x3c   : > { %303 = sbr.rel (!%p298_p2) target bundleno = 276 (0x114), region = 56  ;;  %718 = vmatprep.subr.bf16.mxu0 (%p298_p2), %v989_v1  ;;  %392 = vst.msk [vmem:[#allocation3] sm:$0xff] (%p298_p2), %vm391_vm0, %v990_v2  ;;  %393 = vst.msk [vmem:[#allocation4] sm:$0xff] (%p298_p2), %vm391_vm0, %v989_v1  ;;  %726 = vmatprep.mubr.msk.bf16.mxu0 (%p298_p2), %vm991_vm1, %v989_v1  ;;  %v828_v4 = vld [vmem:[#allocation8 + $0x8] sm:$0xff] (%p298_p2)   ;;  %v829_v5 = vld [vmem:[#allocation8] sm:$0xff] (%p298_p2)   ;;  %vm344_vm2 = vcmask (%p298_p2), 523264  }
  0x3d   : > { %719 = vmatpush3.bf16.msra.mxu0 (%p298_p2), %v826_v0  ;;  %v304_v6 = vld [vmem:[#allocation5] sm:$0xf] (%p298_p2)  ;;  %v682_v7 = vld [vmem:[%s1153_s2] ss:$0 sm:$0xff] (%p298_p2) }
  0x3e   : > { %720 = vmatprep.subr.bf16.mxu0 (%p298_p2), %v989_v1 }
  0x41   : > { %721 = vmatpush3.bf16.msra.mxu0 %v827_v3 }
  0x42   : > { %722 = vmatprep.subr.bf16.mxu0 %v989_v1 }
  0x45   : > { %723 = vmatpush3.bf16.msra.mxu0 %v828_v4 }
  0x46   : > { %724 = vmatprep.subr.bf16.mxu0 %v989_v1 }
  0x49   : > { %725 = vmatpush3.bf16.msra.mxu0 %v829_v5 }
  0x4c   : > { %727 = vmatmul.mubr.msk.bf16.vlgmr.msra.gmra.mxu0 %vm344_vm2, %v304_v6 }
 0x10c   : > { %v382_v8 = vpop.f32.mrf.mxu0 }
 0x10d   : > { %v383_v9 = vadd.f32 %v682_v7, %v382_v8 }
 0x10e   : > { %v728_v10 = vpop.f32.mrf.mxu0 }
 0x10f   : > { %v388_v11 = vmax.f32 %v383_v9, 0.0 }
 0x110   : > { %v385_v12 = vpop.f32.mrf.mxu0 }
 0x111   : > { %v389_v13 = vpack.c.bf16 %v388_v11, %v388_v11 }
 0x112   : > { %v729_v14 = vpop.f32.mrf.mxu0 }
 0x113   : > { %390 = vst [vmem:[#allocation2] sm:$0xf] %v389_v13 }
 0x114 PF: > { %v830_v15 = vld [vmem:[#allocation10 + $0x38] sm:$0xff]   ;;  %v992_v16 = vmov 0.0   ;;  %v831_v17 = vld [vmem:[#allocation10 + $0x30] sm:$0xff]   ;;  %vm993_vm3 = vmmov 0   ;;  %v832_v18 = vld [vmem:[#allocation10 + $0x28] sm:$0xff]   ;;  %p697_p3 = scmp.ne.s32.totalorder %s974_s18, 0 }
 0x115   : > { %730 = vmatprep.subr.bf16.mxu0 %v992_v16  ;;  %746 = vmatprep.mubr.msk.bf16.mxu0 %vm993_vm3, %v992_v16  ;;  %v833_v19 = vld [vmem:[#allocation10 + $0x20] sm:$0xff]   ;;  %v834_v20 = vld [vmem:[#allocation10 + $0x18] sm:$0xff]   ;;  %v835_v21 = vld [vmem:[#allocation10 + $0x10] sm:$0xff]  }
 0x116   : > { %731 = vmatpush3.bf16.msra.mxu0 %v830_v15  ;;  %v836_v22 = vld [vmem:[#allocation10 + $0x8] sm:$0xff]   ;;  %v837_v23 = vld [vmem:[#allocation10] sm:$0xff]  }
 0x117   : > { %732 = vmatprep.subr.bf16.mxu0 %v992_v16  ;;  %v688_v25 = vld [vmem:[%s1155_s4] ss:$0 sm:$0xff] }
 0x11a   : > { %733 = vmatpush3.bf16.msra.mxu0 %v831_v17  ;;  %v394_v24 = vld [vmem:[#allocation2] sm:$0xf] }
 0x11b   : > { %734 = vmatprep.subr.bf16.mxu0 %v992_v16 }
 0x11e   : > { %735 = vmatpush3.bf16.msra.mxu0 %v832_v18 }
 0x11f   : > { %736 = vmatprep.subr.bf16.mxu0 %v992_v16 }
 0x122   : > { %737 = vmatpush3.bf16.msra.mxu0 %v833_v19 }
 0x123   : > { %738 = vmatprep.subr.bf16.mxu0 %v992_v16 }
 0x126   : > { %739 = vmatpush3.bf16.msra.mxu0 %v834_v20 }
 0x127   : > { %740 = vmatprep.subr.bf16.mxu0 %v992_v16 }
 0x12a   : > { %741 = vmatpush3.bf16.msra.mxu0 %v835_v21 }
 0x12b   : > { %742 = vmatprep.subr.bf16.mxu0 %v992_v16 }
 0x12e   : > { %743 = vmatpush3.bf16.msra.mxu0 %v836_v22 }
 0x12f   : > { %744 = vmatprep.subr.bf16.mxu0 %v992_v16 }
 0x132   : > { %745 = vmatpush3.bf16.msra.mxu0 %v837_v23 }
 0x135   : > { %747 = vmatmul.mubr.bf16.vlgmr.msra.gmra.mxu0 %v394_v24 }
 0x1f5   : > { %v500_v26 = vpop.f32.mrf.mxu0 }
 0x1f6   : > { %v501_v27 = vadd.f32 %v688_v25, %v500_v26 }
 0x1f7   : > { %v748_v28 = vpop.f32.mrf.mxu0  ;;  %508 = sbr.rel (%p697_p3) target bundleno = 931 (0x3a3), region = 60 }
 0x1f9   : > { %v503_v29 = vpop.f32.mrf.mxu0 }
 0x1fb   : > { %v749_v30 = vpop.f32.mrf.mxu0 }
 0x1fc   : > { %510 = vmax.xlane.f32.xlu0 %v501_v27  ;;  %v994_v31 = vmov 0   ;;  %v509_v32 = vld [vmem:[#allocation3] sm:$0xff]  ;;  %vm529_vm4 = vcmask 7168   ;;  %v513_v42 = vld [vmem:[#allocation4] sm:$0xff] }
 0x1fd   : > { %838 = vset.pattern.permute.xlu0 %v994_v31 }
 0x285   : > { %v511_v33 = vpop.xlane.xlu0 %510 }
 0x286   : > { %v512_v34 = vmax.f32 %v509_v32, %v511_v33 }
 0x288   : > { %v514_v35 = vsub.f32 %v509_v32, %v512_v34  ;;  %531 = vst.msk [vmem:[#allocation3] sm:$0xff] %vm529_vm4, %v512_v34  ;;  %520 = vperm.xlu0 %838, %v512_v34  }
 0x28a   : > { %v515_v40 = vmul.f32 1.442695, %v514_v35 }
 0x303   : > { %v521_v36 = vpop.permute.xlu0 %520 }
 0x304   : > { %v523_v37 = vsub.f32 %v501_v27, %v521_v36 }
 0x306   : > { %v524_v38 = vmul.f32 1.442695, %v523_v37 }
 0x308   : > { %839 = vpow2.f32 %v524_v38 }
 0x309   : > { %841 = vpow2.f32 %v515_v40 }
 0x315   : > { %v840_v39 = vpop.eup %839 }
 0x316   : > { %526 = vadd.xlane.f32.xlu1 %v840_v39  ;;  %v842_v41 = vpop.eup %841 }
 0x317   : > { %v517_v43 = vmul.f32 %v842_v41, %v513_v42 }
 0x39f   : > { %v527_v44 = vpop.xlane.xlu1 %526 }
 0x3a0   : > { %v528_v45 = vadd.f32 %v527_v44, %v517_v43 }
 0x3a2   : > { %530 = vst.msk [vmem:[#allocation4] sm:$0xff] %vm529_vm4, %v528_v45 }
 0x3a3 PF: > { %p698_p5 = scmp.ne.s32.totalorder %s974_s18, 1 }
 0x3a5   : > { %535 = sbr.rel (%p698_p5) target bundleno = 1084 (0x43c), region = 64 }
 0x3aa   : > { %v537_v46 = vld [vmem:[#allocation4] sm:$0xff]  ;;  %v995_v47 = vmov 0   ;;  %v536_v49 = vld [vmem:[#allocation3] sm:$0xff] }
 0x3ab   : > { %843 = vset.pattern.permute.xlu0 %v995_v47  ;;  %844 = vlog2.f32 %v537_v46 }
 0x3b8   : > { %v845_v48 = vpop.eup %844 }
 0x3b9   : > { %v539_v50 = vmul.f32 0.6931472, %v845_v48 }
 0x3bb   : > { %v540_v51 = vadd.f32 %v539_v50, %v536_v49 }
 0x3bd   : > { %543 = vperm.xlu0 %843, %v540_v51  }
 0x438   : > { %v544_v52 = vpop.permute.xlu0 %543 }
 0x439   : > { %v546_v53 = vsub.f32 %v501_v27, %v544_v52 }
 0x43b   : > { %547 = vst [vmem:[#allocation11] sm:$0xff] %v546_v53 }
 0x43c PF: > { %p1128_p8 = scmp.eq.s32.totalorder %s670_s23, 1  ;;  %s996_s18 = smov [#allocation11]  }
 0x43d   : > { %s564_s6 = sshll.u32 %s996_s18, 4  ;;  %s565_s6 = int_to_ptr.vmem [resolvable:$true] %s564_s6 }
 0x43e   : > { %s924_s7 = scalar_lea.vmem %s565_s6, 128  ;;  %s930_s8 = scalar_lea.vmem %s565_s6, 256 }
 0x43f   : > { %p925_p10 = scmp.ne.s32.totalorder %s565_s6, %s924_s7  ;;  %p931_p6 = scmp.lt.s32.totalorder %s565_s6, %s565_s6 }
 0x440   : > { %p932_p13 = scmp.lt.s32.totalorder %s930_s8, %s924_s7 }
 0x441   : > { %p926_p11 = pnand %p925_p10, %p1128_p8 }
 0x442   : > { %p933_p0 = por %p932_p13, %p931_p6 }
 0x443   : > { %p927_p12 = pneg %p926_p11 }
 0x445   : > { %p934_p1 = pnand %p933_p0, %p927_p12 }
 0x447   : > { %937 = shalt.err (!%p934_p1)
}
 0x448   : > { %763 = dma.vmem_to_hbm [thread:$0]  (%p1128_p8), %s565_s6, 128, %s1156_s5, [#allocation7]  }
 0x449 PF: > { %p787_p4 = scmp.ge.s32.totalorder %s982_s20, 2  ;;  %p788_p9 = scmp.eq.s32.totalorder %s671_s24, 1 }
 0x44b   : > { %p777_p7 = pnand %p788_p9, %p787_p4 }
 0x44d   : > { %p778_p2 = pneg %p777_p7 }
 0x44f   : > { %969 = dma.done.wait (%p778_p2), [#allocation7], 128  }
 0x450   : > { %971 = vsyncadd (%p778_p2), [#allocation7], 4294967168  ;;  %s20_s20 = sadd.s32 1, %s982_s20   ;;  %s1165_s18 = smov %s978_s19 }
 0x451   : > { %p17_p3 = scmp.ge.s32.totalorder %s20_s20, 4   ;;  %s1166_s19 = smov %s1168_s28 }
 0x453   :  { %19 = sbr.rel (!%p17_p3) target bundleno = 5 (0x5), region = 102 }
 0x458   :  { %582 = vsyncpa [#allocation6], 1 }
 0x459   :  { %584 = vsyncpa [#allocation6 + $0x1], 1 }
 0x45a   :  { %585 = vsyncpa [#allocation9], 1 }
 0x45b   :  { %586 = vsyncpa [#allocation7], 1 }
 0x45c   :  { %588 = vsyncpa [#allocation7 + $0x1], 1 }

</bundles_post_ra>
